<compile_context>
chip_gen: v5e
topology: v5e:2x2
jax: 0.10.0
libtpu: 0.0.40
codegen_flags: <defaults>
</compile_context>

<pallas_src>
import functools

import jax
import jax.numpy as jnp
from jax.experimental import pallas as pl
from jax.experimental.pallas import tpu as pltpu


def _lora_kernel_f32out(x_ref, wt_ref, p_ref, bt_ref, bias_ref, o_ref):
    """f32 output: accumulate x @ W^T directly into the resident output tile.

    x_ref    : (tm, tk)   input tile
    wt_ref   : (tk, tn)   W^T tile (streamed from HBM)
    p_ref    : (tm, r)    precomputed x @ A^T (f32), follows i only
    bt_ref   : (r,  tn)   (scaling * B)^T (f32), follows j only
    bias_ref : (1,  tn)   bias (f32)
    o_ref    : (tm, tn)   f32 output tile, revisited across k
    """
    k = pl.program_id(2)

    @pl.when(k == 0)
    def _():
        # Fold bias + rank-r LoRA correction into the accumulator init.
        o_ref[...] = (
            jnp.broadcast_to(bias_ref[...], o_ref.shape)
            + jnp.dot(p_ref[...], bt_ref[...],
                      preferred_element_type=jnp.float32))

    o_ref[...] += jnp.dot(x_ref[...], wt_ref[...],
                          preferred_element_type=jnp.float32)


def _lora_kernel_scratch(x_ref, wt_ref, p_ref, bt_ref, bias_ref, o_ref,
                         acc_ref):
    """Low-precision output: f32 scratch accumulator, cast once at k==last."""
    k = pl.program_id(2)

    @pl.when(k == 0)
    def _():
        acc_ref[...] = (
            jnp.broadcast_to(bias_ref[...], acc_ref.shape)
            + jnp.dot(p_ref[...], bt_ref[...],
                      preferred_element_type=jnp.float32))

    acc_ref[...] += jnp.dot(x_ref[...], wt_ref[...],
                            preferred_element_type=jnp.float32)

    @pl.when(k == pl.num_programs(2) - 1)
    def _():
        o_ref[...] = acc_ref[...].astype(o_ref.dtype)


def _round_up(a, b):
    return ((a + b - 1) // b) * b


def lora_linear(x, weight, lora_a, lora_b, bias=None, *, alpha=1.0, r=4,
                tm=256, tn=1024, tk=1024, stream_dtype=None):
    """x: (M, K), weight: (N, K), lora_a: (r, K), lora_b: (N, r), bias: (N,).

    stream_dtype: optionally stream x / W^T in a lower precision (e.g.
    jnp.bfloat16) with f32 MXU accumulation. Default None preserves the
    module's numerics exactly.
    """
    M, K = x.shape
    N, K2 = weight.shape
    assert K2 == K, "weight in_features mismatch"
    r_dim = lora_a.shape[0]
    scaling = alpha / r if r > 0 else 1.0
    out_dtype = x.dtype

    # --- Hoisted rank-r projection (done once by XLA, in f32) -------------
    if r_dim > 0:
        p = jnp.dot(x, lora_a.T, preferred_element_type=jnp.float32)  # (M, r)
        bt = (lora_b.astype(jnp.float32) * scaling).T                 # (r, N)
    else:
        # Degenerate r=0: use a zero rank-1 correction (mathematically a no-op).
        r_dim = 1
        p = jnp.zeros((M, 1), jnp.float32)
        bt = jnp.zeros((1, N), jnp.float32)

    bias2d = (jnp.zeros((1, N), jnp.float32) if bias is None
              else bias.reshape(1, N).astype(jnp.float32))

    # One-time layout plumbing (XLA, not per-tile):
    if stream_dtype is not None:
        x_s = x.astype(stream_dtype)
        wt = weight.T.astype(stream_dtype)            # (K, N)
    else:
        x_s = x
        wt = weight.T                                  # (K, N)

    # --- Tile selection + explicit zero padding ---------------------------
    # Clamp targets to the (8,128)-rounded extents; pad arrays to tile
    # multiples (zero-padding K contributes nothing to the contraction).
    tm = min(tm, _round_up(M, 8))
    tn = min(tn, _round_up(N, 128))
    tk = min(tk, _round_up(K, 128))
    Mp, Np, Kp = _round_up(M, tm), _round_up(N, tn), _round_up(K, tk)

    if (Mp, Kp) != (M, K):
        x_s = jnp.pad(x_s, ((0, Mp - M), (0, Kp - K)))
    if (Kp, Np) != (K, N):
        wt = jnp.pad(wt, ((0, Kp - K), (0, Np - N)))
    if Mp != M:
        p = jnp.pad(p, ((0, Mp - M), (0, 0)))
    if Np != N:
        bt = jnp.pad(bt, ((0, 0), (0, Np - N)))
        bias2d = jnp.pad(bias2d, ((0, 0), (0, Np - N)))

    grid = (Mp // tm, Np // tn, Kp // tk)

    in_specs = [
        pl.BlockSpec((tm, tk), lambda i, j, k: (i, k)),      # x
        pl.BlockSpec((tk, tn), lambda i, j, k: (k, j)),      # W^T
        pl.BlockSpec((tm, r_dim), lambda i, j, k: (i, 0)),   # p = x @ A^T
        pl.BlockSpec((r_dim, tn), lambda i, j, k: (0, j)),   # (s*B)^T
        pl.BlockSpec((1, tn), lambda i, j, k: (0, j)),       # bias
    ]
    out_spec = pl.BlockSpec((tm, tn), lambda i, j, k: (i, j))

    # --- VMEM budget (double-buffered inputs + resident out/acc) ----------
    in_b = x_s.dtype.itemsize
    w_b = wt.dtype.itemsize
    o_b = jnp.dtype(out_dtype).itemsize
    use_scratch = jnp.dtype(out_dtype) != jnp.dtype(jnp.float32)
    vmem = 2 * (tm * tk * in_b + tk * tn * w_b
                + tm * r_dim * 4 + r_dim * tn * 4 + tn * 4)
    vmem += 2 * tm * tn * o_b
    if use_scratch:
        vmem += tm * tn * 4
    vmem_limit = min(int(vmem * 1.5) + (2 << 20), 64 * 1024 * 1024)

    if use_scratch:
        kernel = _lora_kernel_scratch
        scratch_shapes = [pltpu.VMEM((tm, tn), jnp.float32)]
    else:
        kernel = _lora_kernel_f32out
        scratch_shapes = []

    out = pl.pallas_call(
        kernel,
        out_shape=jax.ShapeDtypeStruct((Mp, Np), out_dtype),
        grid_spec=pltpu.PrefetchScalarGridSpec(
            num_scalar_prefetch=0,
            grid=grid,
            in_specs=in_specs,
            out_specs=out_spec,
            scratch_shapes=scratch_shapes,
        ),
        compiler_params=pltpu.CompilerParams(
            dimension_semantics=("parallel", "parallel", "arbitrary"),
            vmem_limit_bytes=vmem_limit),
    )(x_s, wt, p, bt, bias2d)

    if (Mp, Np) != (M, N):
        out = out[:M, :N]
    return out


if __name__ == "__main__":
    # Small shapes consistent with the module.
    batch, in_features, out_features, r, alpha = 8, 32, 16, 4, 1.0

    key = jax.random.PRNGKey(0)
    kx, kw, ka, kb = jax.random.split(key, 4)

    x = jax.random.normal(kx, (batch, in_features), dtype=jnp.float32)
    # Deterministic parameter init (module uses torch.empty for W -> init here).
    weight = jax.random.normal(kw, (out_features, in_features), dtype=jnp.float32) * 0.1
    lora_a = jax.random.normal(ka, (r, in_features), dtype=jnp.float32) * 0.01
    lora_b = jax.random.normal(kb, (out_features, r), dtype=jnp.float32) * 0.01
    bias = jnp.zeros((out_features,), dtype=jnp.float32)

    out = lora_linear(x, weight, lora_a, lora_b, bias, alpha=alpha, r=r)
    out = jax.block_until_ready(out)

    # Reference check in plain JAX (original formulation).
    scaling = alpha / r
    w_eff = weight + scaling * (lora_b @ lora_a)
    ref = x @ w_eff.T + bias
    assert out.shape == (batch, out_features)
    assert jnp.allclose(out, ref, atol=1e-4, rtol=1e-4), "mismatch vs reference"

    # Also exercise the low-precision-output / scratch path once.
    out_bf16 = lora_linear(x.astype(jnp.bfloat16), weight, lora_a, lora_b,
                           bias, alpha=alpha, r=r)
    out_bf16 = jax.block_until_ready(out_bf16)
    assert out_bf16.shape == (batch, out_features)
    assert jnp.allclose(out_bf16.astype(jnp.float32), ref, atol=5e-2, rtol=5e-2)

    print("KERNEL_OK")
</pallas_src>

<mosaic_0001>
module attributes {stable_mosaic.version = 11 : i64} {
  func.func @_lora_kernel_f32out(%arg0: i32, %arg1: i32, %arg2: i32, %arg3: memref<8x128xf32, #tpu.memory_space<vmem>>, %arg4: memref<128x128xf32, #tpu.memory_space<vmem>>, %arg5: memref<8x4xf32, #tpu.memory_space<vmem>>, %arg6: memref<4x128xf32, #tpu.memory_space<vmem>>, %arg7: memref<1x128xf32, #tpu.memory_space<vmem>>, %arg8: memref<8x128xf32, #tpu.memory_space<vmem>>) attributes {dimension_semantics = [#tpu.dimension_semantics<parallel>, #tpu.dimension_semantics<parallel>, #tpu.dimension_semantics<arbitrary>], iteration_bounds = array<i64: 1, 1, 1>, scalar_prefetch = 0 : i64, scratch_operands = 0 : i64, tpu.core_type = #tpu.core_type<tc>, window_params = [{transform_indices = @transform_0, window_bounds = array<i64: 8, 128>}, {transform_indices = @transform_1, window_bounds = array<i64: 128, 128>}, {transform_indices = @transform_2, window_bounds = array<i64: 8, 4>}, {transform_indices = @transform_3, window_bounds = array<i64: 4, 128>}, {transform_indices = @transform_4, window_bounds = array<i64: 1, 128>}, {transform_indices = @transform_5, window_bounds = array<i64: 8, 128>}]} {
    %c0_i32 = arith.constant 0 : i32
    %0 = arith.cmpi eq, %arg2, %c0_i32 : i32
    %1 = arith.extui %0 : i1 to i32
    %c0_i32_0 = arith.constant 0 : i32
    %2 = arith.cmpi ne, %1, %c0_i32_0 : i32
    scf.if %2 {
      %c0_8 = arith.constant 0 : index
      %c0_9 = arith.constant 0 : index
      %9 = vector.load %arg7[%c0_8, %c0_9] : memref<1x128xf32, #tpu.memory_space<vmem>>, vector<1x128xf32>
      %10 = vector.shape_cast %9 : vector<1x128xf32> to vector<1x128xf32>
      %11 = vector.broadcast %10 : vector<1x128xf32> to vector<8x128xf32>
      %c0_10 = arith.constant 0 : index
      %c0_11 = arith.constant 0 : index
      %12 = vector.load %arg5[%c0_10, %c0_11] : memref<8x4xf32, #tpu.memory_space<vmem>>, vector<8x4xf32>
      %c0_12 = arith.constant 0 : index
      %c0_13 = arith.constant 0 : index
      %13 = vector.load %arg6[%c0_12, %c0_13] : memref<4x128xf32, #tpu.memory_space<vmem>>, vector<4x128xf32>
      %cst_14 = arith.constant dense<0.000000e+00> : vector<8x128xf32>
      %14 = tpu.matmul %12, %13, %cst_14 {dimension_numbers = #tpu.dot_dimension_numbers<[1], [0], [0], [1], [0, 0, 1, 1], [], []>} : vector<8x4xf32>, vector<4x128xf32>, vector<8x128xf32> -> vector<8x128xf32>
      %15 = arith.addf %11, %14 : vector<8x128xf32>
      %c0_15 = arith.constant 0 : index
      %c0_16 = arith.constant 0 : index
      %16 = vector.load %arg8[%c0_15, %c0_16] : memref<8x128xf32, #tpu.memory_space<vmem>>, vector<8x128xf32>
      tpu.vector_store %arg8[%c0_15, %c0_16], %15 {strides = array<i32>} : memref<8x128xf32, #tpu.memory_space<vmem>>, vector<8x128xf32>,
    } else {
    }
    %c0 = arith.constant 0 : index
    %c0_1 = arith.constant 0 : index
    %3 = vector.load %arg8[%c0, %c0_1] : memref<8x128xf32, #tpu.memory_space<vmem>>, vector<8x128xf32>
    %c0_2 = arith.constant 0 : index
    %c0_3 = arith.constant 0 : index
    %4 = vector.load %arg3[%c0_2, %c0_3] : memref<8x128xf32, #tpu.memory_space<vmem>>, vector<8x128xf32>
    %c0_4 = arith.constant 0 : index
    %c0_5 = arith.constant 0 : index
    %5 = vector.load %arg4[%c0_4, %c0_5] : memref<128x128xf32, #tpu.memory_space<vmem>>, vector<128x128xf32>
    %cst = arith.constant dense<0.000000e+00> : vector<8x128xf32>
    %6 = tpu.matmul %4, %5, %cst {dimension_numbers = #tpu.dot_dimension_numbers<[1], [0], [0], [1], [0, 0, 1, 1], [], []>} : vector<8x128xf32>, vector<128x128xf32>, vector<8x128xf32> -> vector<8x128xf32>
    %7 = arith.addf %3, %6 : vector<8x128xf32>
    %c0_6 = arith.constant 0 : index
    %c0_7 = arith.constant 0 : index
    %8 = vector.load %arg8[%c0_6, %c0_7] : memref<8x128xf32, #tpu.memory_space<vmem>>, vector<8x128xf32>
    tpu.vector_store %arg8[%c0_6, %c0_7], %7 {strides = array<i32>} : memref<8x128xf32, #tpu.memory_space<vmem>>, vector<8x128xf32>,
    return
  }
  func.func @transform_0(%arg0: i32, %arg1: i32, %arg2: i32) -> (i32, i32) {
    %c0_i32 = arith.constant 0 : i32
    return %arg0, %arg2 : i32, i32
  }
  func.func @transform_1(%arg0: i32, %arg1: i32, %arg2: i32) -> (i32, i32) {
    %c0_i32 = arith.constant 0 : i32
    return %arg2, %arg1 : i32, i32
  }
  func.func @transform_2(%arg0: i32, %arg1: i32, %arg2: i32) -> (i32, i32) {
    %c0_i32 = arith.constant 0 : i32
    %c0_i32_0 = arith.constant 0 : i32
    return %arg0, %c0_i32 : i32, i32
  }
  func.func @transform_3(%arg0: i32, %arg1: i32, %arg2: i32) -> (i32, i32) {
    %c0_i32 = arith.constant 0 : i32
    %c0_i32_0 = arith.constant 0 : i32
    return %c0_i32, %arg1 : i32, i32
  }
  func.func @transform_4(%arg0: i32, %arg1: i32, %arg2: i32) -> (i32, i32) {
    %c0_i32 = arith.constant 0 : i32
    %c0_i32_0 = arith.constant 0 : i32
    return %c0_i32, %arg1 : i32, i32
  }
  func.func @transform_5(%arg0: i32, %arg1: i32, %arg2: i32) -> (i32, i32) {
    %c0_i32 = arith.constant 0 : i32
    return %arg0, %arg1 : i32, i32
  }
}

</mosaic_0001>

<bundles_post_ra>
// kernel: tpu_custom_call.1
= control target key start
LH: loop header
LB: loop body
LE: loop exit
PB: predicated region body
PF: predicated region fallthrough
CT: control target
= control target key end

     0   :  { %10 = vsyncpa [#allocation3], 0  ;;  %s245_s0 = inlined_call_operand.vmem [shape: f32[8,128], index: 0, kind: input, shape index: {}]   ;;  %s246_s1 = inlined_call_operand.hbm [shape: f32[128,128], index: 1, kind: input, shape index: {}]   ;;  %s247_s2 = inlined_call_operand.vmem [shape: f32[8,4], index: 2, kind: input, shape index: {}]   ;;  %s248_s3 = inlined_call_operand.vmem [shape: f32[4,128], index: 3, kind: input, shape index: {}]   ;;  %s249_s4 = inlined_call_operand.vmem [shape: f32[1,128], index: 4, kind: input, shape index: {}]   ;;  %s250_s5 = inlined_call_operand.hbm [shape: f32[8,128], index: 5, kind: output, shape index: {}]  }
   0x1   :  { %11 = vsyncpa [#allocation4], 0  ;;  %s18_s20 = sshll.u32 %s246_s1, 4  ;;  %s193_s21 = smov [#allocation2]   ;;  %s19_s20 = int_to_ptr.hbm [resolvable:$true] %s18_s20 }
   0x2   :  { %s20_s22 = sshll.u32 %s193_s21, 4  ;;  %s194_s23 = smov 128   ;;  %s21_s22 = int_to_ptr.vmem [resolvable:$true] %s20_s22 }
   0x3   :  { %s195_s24 = smov 8  }
   0x4   :  { %26 = dma.hbm_to_vmem [thread:$0]  %s19_s20, 2048, %s21_s22, [#allocation3], %s194_s23, %s194_s23, %s195_s24  }
   0x5   :  { %189 = dma.done.wait [#allocation3], 2048  }
   0x6   :  { %190 = vsyncadd [#allocation3], 4294965248  ;;  %v94_v0 = vld [vmem:[#allocation2 + $0x78] sm:$0xff]  ;;  %v93_v1 = vld [vmem:[#allocation2 + $0x70] sm:$0xff]  ;;  %vm51_vm0 = vcmask 1043456   ;;  %vm47_vm1 = vcmask 31744  }
   0x7   :  { %95 = vmatpush.msra.mxu1 %v94_v0  ;;  %v92_v2 = vld [vmem:[#allocation2 + $0x68] sm:$0xff]  ;;  %v46_v3 = vld [vmem:[%s248_s3] sm:$0xf]  ;;  %v90_v6 = vld [vmem:[#allocation2 + $0x58] sm:$0xff]  ;;  %s196_s30 = smov [#allocation5]   ;;  %s124_s9 = sshll.u32 %s250_s5, 4  ;;  %s125_s9 = int_to_ptr.hbm [resolvable:$true] %s124_s9 }
   0x8   :  { %v91_v4 = vld [vmem:[#allocation2 + $0x60] sm:$0xff]  ;;  %134 = vmatpush.msk.msra.mxu0 %vm51_vm0, %v46_v3  ;;  %v89_v7 = vld [vmem:[#allocation2 + $0x50] sm:$0xff]  ;;  %v88_v8 = vld [vmem:[#allocation2 + $0x48] sm:$0xff]  ;;  %s122_s6 = sshll.u32 %s196_s30, 4  ;;  %s123_s6 = int_to_ptr.vmem [resolvable:$true] %s122_s6 }
   0x9   :  { %96 = vmatpush.msra.mxu1 %v93_v1  ;;  %v45_v5 = vld [vmem:[%s247_s2] sm:$0xff]  ;;  %v86_v10 = vld [vmem:[#allocation2 + $0x38] sm:$0xff]  ;;  %v85_v11 = vld [vmem:[#allocation2 + $0x30] sm:$0xff] }
   0xa   :  { %135 = vmatmul.msk.f32.vlgmr.msra.gmra.mxu0 %vm47_vm1, %v45_v5  ;;  %v87_v9 = vld [vmem:[#allocation2 + $0x40] sm:$0xff]  ;;  %v84_v12 = vld [vmem:[#allocation2 + $0x28] sm:$0xff]  ;;  %v82_v14 = vld [vmem:[#allocation2 + $0x18] sm:$0xff] }
   0xb   :  { %97 = vmatpush.msra.mxu1 %v92_v2  ;;  %v83_v13 = vld [vmem:[#allocation2 + $0x20] sm:$0xff]  ;;  %v81_v15 = vld [vmem:[#allocation2 + $0x10] sm:$0xff]  ;;  %v80_v16 = vld [vmem:[#allocation2 + $0x8] sm:$0xff] }
   0xc   :  { %v79_v17 = vld [vmem:[#allocation2] sm:$0xff] }
   0xd   :  { %98 = vmatpush.msra.mxu1 %v91_v4  ;;  %v78_v18 = vld [vmem:[%s245_s0] sm:$0xff] }
   0xe   :  { %v140_v19 = vld [vmem:[%s249_s4] ss:$0 sm:$0xff] }
   0xf   :  { %99 = vmatpush.msra.mxu1 %v90_v6 }
  0x11   :  { %100 = vmatpush.msra.mxu1 %v89_v7 }
  0x13   :  { %101 = vmatpush.msra.mxu1 %v88_v8 }
  0x15   :  { %102 = vmatpush.msra.mxu1 %v87_v9 }
  0x17   :  { %103 = vmatpush.msra.mxu1 %v86_v10 }
  0x19   :  { %104 = vmatpush.msra.mxu1 %v85_v11 }
  0x1b   :  { %105 = vmatpush.msra.mxu1 %v84_v12 }
  0x1d   :  { %106 = vmatpush.msra.mxu1 %v83_v13 }
  0x1f   :  { %107 = vmatpush.msra.mxu1 %v82_v14 }
  0x21   :  { %108 = vmatpush.msra.mxu1 %v81_v15 }
  0x23   :  { %109 = vmatpush.msra.mxu1 %v80_v16 }
  0x25   :  { %110 = vmatpush.msra.mxu1 %v79_v17 }
  0x26   :  { %111 = vmatmul.f32.vlgmr.msra.gmra.mxu1 %v78_v18 }
  0x87   :  { %v72_v20 = vpop.f32.mrf.mxu0 }
  0x88   :  { %v75_v21 = vadd.f32 %v140_v19, %v72_v20 }
  0xa3   :  { %v112_v22 = vpop.f32.mrf.mxu1 }
  0xa4   :  { %v115_v23 = vadd.f32 %v112_v22, %v75_v21 }
  0xa6   :  { %116 = vst [vmem:[#allocation5] sm:$0xff] %v115_v23 }
  0xa7   :  { %127 = dma.vmem_to_hbm [thread:$0]  %s123_s6, 128, %s125_s9, [#allocation4]  }
  0xa8   :  { %191 = dma.done.wait [#allocation4], 128  }
  0xa9   :  { %192 = vsyncadd [#allocation4], 4294967168 }
  0xaa   :  { %132 = vsyncpa [#allocation3], 1 }
  0xab   :  { %133 = vsyncpa [#allocation4], 1 }

</bundles_post_ra>
